<compile_context>
chip_gen: v7x
topology: tpu7x:2x2x1
jax: 0.10.0
libtpu: 0.0.40
codegen_flags: <defaults>
</compile_context>

<pallas_src>
import functools

import jax
import jax.numpy as jnp
from jax.experimental import pallas as pl
from jax.experimental.pallas import tpu as pltpu

_LANE = 128
_SUBLANE = 8


def _round_up(x, m):
    return ((x + m - 1) // m) * m


def _choose_tile(batch, tile_b):
    """Pick the batch tile (rows per grid step)."""
    tile_b = max(_SUBLANE, _round_up(tile_b, _SUBLANE))
    if batch > tile_b:
        # >= 2 grid steps automatically; last block may be ragged (masked).
        return tile_b
    # Whole batch fits in one tile: split into two blocks when large enough so
    # the "parallel" batch axis can use both TensorCores on v7x.
    if batch >= 4 * _SUBLANE:
        return _round_up(pl.cdiv(batch, 2), _SUBLANE)
    # Tiny batch: single full-extent block (block dim == array dim is legal).
    return batch


def _gate_nn_kernel(num_hidden_layers, *refs):
    """Fused MLP: num_hidden_layers x (Linear + ReLU) followed by a Linear.

    refs = (x_ref,
            w0, b0, w1, b1, ..., w_{L-1}, b_{L-1},   # hidden layers
            w_gate, b_gate,                          # output (gate) layer
            out_ref)

    x_ref / out_ref are (TILE_B, ...) batch tiles; weights/biases are
    full-extent VMEM-resident blocks (identical across grid steps).
    """
    x_ref = refs[0]
    out_ref = refs[-1]
    params = refs[1:-1]

    h = x_ref[...]

    # Hidden layers: Linear -> ReLU (MXU matmul, f32 accumulate + bias, VPU max).
    # h.astype(w.dtype) is a no-op in the f32 path; in the bf16 path it casts
    # only the per-tile intermediate (weights were pre-cast once in the wrapper).
    for i in range(num_hidden_layers):
        w = params[2 * i][...]
        b = params[2 * i + 1][...]
        h = jnp.dot(h.astype(w.dtype), w, preferred_element_type=jnp.float32) + b
        h = jnp.maximum(h, 0.0)

    # Final gate layer: Linear (no activation), unpadded output.
    w_gate = params[-2][...]
    b_gate = params[-1][...]
    out_ref[...] = (
        jnp.dot(h.astype(w_gate.dtype), w_gate, preferred_element_type=jnp.float32)
        + b_gate
    ).astype(out_ref.dtype)


def gate_nn_forward(x, hidden_params, gate_params, *, tile_b=2048,
                    use_bf16=False, out_dtype=None):
    """Run the fused GateNN forward pass.

    Args:
      x: (batch, in_size) activations (float32 by default).
      hidden_params: list of (W, b); W is (fan_in, fan_out), b is (1, fan_out).
      gate_params: (W_gate, b_gate) with W_gate (hidden, n_components),
                   b_gate (1, n_components).
      tile_b: target batch tile (rows per grid step). 2048-8192 recommended on
              v6e/v7x; keep ~2048 on v5e.
      use_bf16: cast x and the weights to bf16 once in the wrapper (f32
                accumulation inside). Cuts the dominant HBM traffic in half on
                this bandwidth-bound kernel; keep False for 1e-5 f32 accuracy.
      out_dtype: output dtype; defaults to the incoming x dtype.

    Returns:
      (batch, n_components) logits.
    """
    num_hidden_layers = len(hidden_params)
    batch, in_size = x.shape
    w_gate, b_gate = gate_params
    n_components = w_gate.shape[1]
    if out_dtype is None:
        out_dtype = x.dtype

    # Optional bf16 I/O + matmul operands: cast ONCE here (weights stay
    # resident in VMEM across grid steps; never re-cast per step in-kernel).
    if use_bf16:
        x = x.astype(jnp.bfloat16)

    flat = []
    for w, b in hidden_params:
        flat.append(w.astype(jnp.bfloat16) if use_bf16 else w)
        flat.append(b)  # biases stay f32; added after f32 accumulation
    flat.append(w_gate.astype(jnp.bfloat16) if use_bf16 else w_gate)
    flat.append(b_gate)

    # Batch tiling: ragged last block, no jnp.pad of x, no output slice.
    tile = _choose_tile(batch, tile_b)
    grid = (pl.cdiv(batch, tile),)

    # x / out tiles walk the batch; weights/biases are resident
    # (constant index_map, full-extent blocks).
    in_specs = [pl.BlockSpec((tile, in_size), lambda i: (i, 0))]
    for p in flat:
        in_specs.append(pl.BlockSpec(p.shape, lambda i: (0, 0)))
    out_spec = pl.BlockSpec((tile, n_components), lambda i: (i, 0))

    # Advisory cost estimate matching the true (unpadded) traffic.
    flops = 0
    fan_in = in_size
    for w, _ in hidden_params:
        flops += 2 * batch * fan_in * w.shape[1]
        fan_in = w.shape[1]
    flops += 2 * batch * fan_in * n_components
    bytes_accessed = (
        int(x.size) * x.dtype.itemsize
        + sum(int(p.size) * p.dtype.itemsize for p in flat)
        + batch * n_components * jnp.dtype(out_dtype).itemsize
    )

    kernel = functools.partial(_gate_nn_kernel, num_hidden_layers)

    return pl.pallas_call(
        kernel,
        out_shape=jax.ShapeDtypeStruct((batch, n_components), out_dtype),
        grid=grid,
        in_specs=in_specs,
        out_specs=out_spec,
        compiler_params=pltpu.CompilerParams(
            dimension_semantics=("parallel",),
            vmem_limit_bytes=48 * 1024 * 1024),
        cost_estimate=pl.CostEstimate(
            flops=int(flops), transcendentals=0,
            bytes_accessed=int(bytes_accessed)),
    )(x, *flat)


def init_gate_nn_params(key, in_size, n_components, num_layers,
                        num_neuron_gate_layer, init_bias_gate=None):
    """Deterministic PyTorch-style init: U(-1/sqrt(fan_in), 1/sqrt(fan_in))."""
    hidden_params = []
    fan_in = in_size
    for _ in range(num_layers):
        key, kw, kb = jax.random.split(key, 3)
        bound = 1.0 / jnp.sqrt(fan_in)
        w = jax.random.uniform(kw, (fan_in, num_neuron_gate_layer),
                               jnp.float32, -bound, bound)
        b = jax.random.uniform(kb, (1, num_neuron_gate_layer),
                               jnp.float32, -bound, bound)
        hidden_params.append((w, b))
        fan_in = num_neuron_gate_layer

    key, kw, kb = jax.random.split(key, 3)
    bound = 1.0 / jnp.sqrt(fan_in)
    w_gate = jax.random.uniform(kw, (fan_in, n_components),
                                jnp.float32, -bound, bound)
    if init_bias_gate is not None:
        b_gate = jnp.asarray(init_bias_gate, jnp.float32).reshape(1, n_components)
    else:
        b_gate = jax.random.uniform(kb, (1, n_components),
                                    jnp.float32, -bound, bound)
    return hidden_params, (w_gate, b_gate)


def gate_nn_reference(x, hidden_params, gate_params):
    """Pure-JAX reference for correctness check."""
    h = x
    for w, b in hidden_params:
        h = jnp.maximum(h @ w + b, 0.0)
    w_gate, b_gate = gate_params
    return h @ w_gate + b_gate


if __name__ == "__main__":
    # Small shapes consistent with GateNN(in_size, n_components, num_layers, hidden)
    in_size = 16
    n_components = 4
    num_layers = 2
    num_neuron_gate_layer = 32
    init_bias_gate = [0.0] * n_components  # mimic the optional bias init

    key = jax.random.PRNGKey(0)
    hidden_params, gate_params = init_gate_nn_params(
        key, in_size, n_components, num_layers, num_neuron_gate_layer,
        init_bias_gate=init_bias_gate)

    # Case 1: tiny batch (single grid step, tile == batch, full-extent block).
    key, kx = jax.random.split(key)
    x_small = jax.random.normal(kx, (8, in_size), jnp.float32)
    out_small = jax.block_until_ready(
        gate_nn_forward(x_small, hidden_params, gate_params))
    ref_small = gate_nn_reference(x_small, hidden_params, gate_params)
    assert out_small.shape == (8, n_components), out_small.shape
    assert jnp.allclose(out_small, ref_small, atol=1e-5, rtol=1e-5), (
        f"max abs err = {jnp.max(jnp.abs(out_small - ref_small))}")

    # Case 2: non-aligned batch exercising the 2-step grid + ragged last block.
    key, kx = jax.random.split(key)
    x_big = jax.random.normal(kx, (600, in_size), jnp.float32)
    out_big = jax.block_until_ready(
        gate_nn_forward(x_big, hidden_params, gate_params, tile_b=2048))
    ref_big = gate_nn_reference(x_big, hidden_params, gate_params)
    assert out_big.shape == (600, n_components), out_big.shape
    assert jnp.allclose(out_big, ref_big, atol=1e-5, rtol=1e-5), (
        f"max abs err = {jnp.max(jnp.abs(out_big - ref_big))}")

    print("KERNEL_OK")
</pallas_src>

<mosaic_0001>
module attributes {stable_mosaic.version = 11 : i64} {
  func.func @_gate_nn_kernel(%arg0: i32, %arg1: memref<8x16xf32, #tpu.memory_space<vmem>>, %arg2: memref<16x32xf32, #tpu.memory_space<vmem>>, %arg3: memref<1x32xf32, #tpu.memory_space<vmem>>, %arg4: memref<32x32xf32, #tpu.memory_space<vmem>>, %arg5: memref<1x32xf32, #tpu.memory_space<vmem>>, %arg6: memref<32x4xf32, #tpu.memory_space<vmem>>, %arg7: memref<1x4xf32, #tpu.memory_space<vmem>>, %arg8: memref<8x4xf32, #tpu.memory_space<vmem>>) attributes {dimension_semantics = [#tpu.dimension_semantics<parallel>], iteration_bounds = array<i64: 1>, scalar_prefetch = 0 : i64, scratch_operands = 0 : i64, tpu.core_type = #tpu.core_type<tc>, window_params = [{transform_indices = @transform_0, window_bounds = array<i64: 8, 16>}, {pipeline_mode = #tpu.pipeline_mode<synchronous>, transform_indices = @transform_1, window_bounds = array<i64: 16, 32>}, {pipeline_mode = #tpu.pipeline_mode<synchronous>, transform_indices = @transform_2, window_bounds = array<i64: 1, 32>}, {pipeline_mode = #tpu.pipeline_mode<synchronous>, transform_indices = @transform_3, window_bounds = array<i64: 32, 32>}, {pipeline_mode = #tpu.pipeline_mode<synchronous>, transform_indices = @transform_4, window_bounds = array<i64: 1, 32>}, {pipeline_mode = #tpu.pipeline_mode<synchronous>, transform_indices = @transform_5, window_bounds = array<i64: 32, 4>}, {pipeline_mode = #tpu.pipeline_mode<synchronous>, transform_indices = @transform_6, window_bounds = array<i64: 1, 4>}, {transform_indices = @transform_7, window_bounds = array<i64: 8, 4>}]} {
    %c0 = arith.constant 0 : index
    %c0_0 = arith.constant 0 : index
    %0 = vector.load %arg1[%c0, %c0_0] : memref<8x16xf32, #tpu.memory_space<vmem>>, vector<8x16xf32>
    %c0_1 = arith.constant 0 : index
    %c0_2 = arith.constant 0 : index
    %1 = vector.load %arg2[%c0_1, %c0_2] : memref<16x32xf32, #tpu.memory_space<vmem>>, vector<16x32xf32>
    %c0_3 = arith.constant 0 : index
    %c0_4 = arith.constant 0 : index
    %2 = vector.load %arg3[%c0_3, %c0_4] : memref<1x32xf32, #tpu.memory_space<vmem>>, vector<1x32xf32>
    %cst = arith.constant dense<0.000000e+00> : vector<8x32xf32>
    %3 = tpu.matmul %0, %1, %cst {dimension_numbers = #tpu.dot_dimension_numbers<[1], [0], [0], [1], [0, 0, 1, 1], [], []>} : vector<8x16xf32>, vector<16x32xf32>, vector<8x32xf32> -> vector<8x32xf32>
    %4 = vector.broadcast %2 : vector<1x32xf32> to vector<8x32xf32>
    %5 = arith.addf %3, %4 : vector<8x32xf32>
    %cst_5 = arith.constant 0.000000e+00 : f32
    %6 = vector.broadcast %cst_5 : f32 to vector<8x32xf32>
    %7 = arith.maximumf %5, %6 : vector<8x32xf32>
    %c0_6 = arith.constant 0 : index
    %c0_7 = arith.constant 0 : index
    %8 = vector.load %arg4[%c0_6, %c0_7] : memref<32x32xf32, #tpu.memory_space<vmem>>, vector<32x32xf32>
    %c0_8 = arith.constant 0 : index
    %c0_9 = arith.constant 0 : index
    %9 = vector.load %arg5[%c0_8, %c0_9] : memref<1x32xf32, #tpu.memory_space<vmem>>, vector<1x32xf32>
    %cst_10 = arith.constant dense<0.000000e+00> : vector<8x32xf32>
    %10 = tpu.matmul %7, %8, %cst_10 {dimension_numbers = #tpu.dot_dimension_numbers<[1], [0], [0], [1], [0, 0, 1, 1], [], []>} : vector<8x32xf32>, vector<32x32xf32>, vector<8x32xf32> -> vector<8x32xf32>
    %11 = vector.broadcast %9 : vector<1x32xf32> to vector<8x32xf32>
    %12 = arith.addf %10, %11 : vector<8x32xf32>
    %cst_11 = arith.constant 0.000000e+00 : f32
    %13 = vector.broadcast %cst_11 : f32 to vector<8x32xf32>
    %14 = arith.maximumf %12, %13 : vector<8x32xf32>
    %c0_12 = arith.constant 0 : index
    %c0_13 = arith.constant 0 : index
    %15 = vector.load %arg6[%c0_12, %c0_13] : memref<32x4xf32, #tpu.memory_space<vmem>>, vector<32x4xf32>
    %c0_14 = arith.constant 0 : index
    %c0_15 = arith.constant 0 : index
    %16 = vector.load %arg7[%c0_14, %c0_15] : memref<1x4xf32, #tpu.memory_space<vmem>>, vector<1x4xf32>
    %cst_16 = arith.constant dense<0.000000e+00> : vector<8x4xf32>
    %17 = tpu.matmul %14, %15, %cst_16 {dimension_numbers = #tpu.dot_dimension_numbers<[1], [0], [0], [1], [0, 0, 1, 1], [], []>} : vector<8x32xf32>, vector<32x4xf32>, vector<8x4xf32> -> vector<8x4xf32>
    %18 = vector.broadcast %16 : vector<1x4xf32> to vector<8x4xf32>
    %19 = arith.addf %17, %18 : vector<8x4xf32>
    %c0_17 = arith.constant 0 : index
    %c0_18 = arith.constant 0 : index
    %20 = vector.load %arg8[%c0_17, %c0_18] : memref<8x4xf32, #tpu.memory_space<vmem>>, vector<8x4xf32>
    tpu.vector_store %arg8[%c0_17, %c0_18], %19 {strides = array<i32>} : memref<8x4xf32, #tpu.memory_space<vmem>>, vector<8x4xf32>,
    return
  }
  func.func @transform_0(%arg0: i32) -> (i32, i32) {
    %c0_i32 = arith.constant 0 : i32
    %c0_i32_0 = arith.constant 0 : i32
    return %arg0, %c0_i32 : i32, i32
  }
  func.func @transform_1(%arg0: i32) -> (i32, i32) {
    %c0_i32 = arith.constant 0 : i32
    %c0_i32_0 = arith.constant 0 : i32
    %c0_i32_1 = arith.constant 0 : i32
    return %c0_i32, %c0_i32_0 : i32, i32
  }
  func.func @transform_2(%arg0: i32) -> (i32, i32) {
    %c0_i32 = arith.constant 0 : i32
    %c0_i32_0 = arith.constant 0 : i32
    %c0_i32_1 = arith.constant 0 : i32
    return %c0_i32, %c0_i32_0 : i32, i32
  }
  func.func @transform_3(%arg0: i32) -> (i32, i32) {
    %c0_i32 = arith.constant 0 : i32
    %c0_i32_0 = arith.constant 0 : i32
    %c0_i32_1 = arith.constant 0 : i32
    return %c0_i32, %c0_i32_0 : i32, i32
  }
  func.func @transform_4(%arg0: i32) -> (i32, i32) {
    %c0_i32 = arith.constant 0 : i32
    %c0_i32_0 = arith.constant 0 : i32
    %c0_i32_1 = arith.constant 0 : i32
    return %c0_i32, %c0_i32_0 : i32, i32
  }
  func.func @transform_5(%arg0: i32) -> (i32, i32) {
    %c0_i32 = arith.constant 0 : i32
    %c0_i32_0 = arith.constant 0 : i32
    %c0_i32_1 = arith.constant 0 : i32
    return %c0_i32, %c0_i32_0 : i32, i32
  }
  func.func @transform_6(%arg0: i32) -> (i32, i32) {
    %c0_i32 = arith.constant 0 : i32
    %c0_i32_0 = arith.constant 0 : i32
    %c0_i32_1 = arith.constant 0 : i32
    return %c0_i32, %c0_i32_0 : i32, i32
  }
  func.func @transform_7(%arg0: i32) -> (i32, i32) {
    %c0_i32 = arith.constant 0 : i32
    %c0_i32_0 = arith.constant 0 : i32
    return %arg0, %c0_i32 : i32, i32
  }
}

</mosaic_0001>

<bundles_post_ra>
// kernel: tpu_custom_call.1
= control target key start
LH: loop header
LB: loop body
LE: loop exit
PB: predicated region body
PF: predicated region fallthrough
CT: control target
= control target key end

     0   :  { %12 = vsyncpa [#allocation3], 0  ;;  %s395_s24 = smov [#allocation2]   ;;  %s495_s0 = inlined_call_operand.vmem [shape: f32[8,16], index: 0, kind: input, shape index: {}]   ;;  %s496_s1 = inlined_call_operand.hbm [shape: f32[16,32], index: 1, kind: input, shape index: {}]   ;;  %s497_s2 = inlined_call_operand.vmem [shape: f32[1,32], index: 2, kind: input, shape index: {}]   ;;  %s498_s3 = inlined_call_operand.vmem [shape: f32[32,32], index: 3, kind: input, shape index: {}]   ;;  %s499_s4 = inlined_call_operand.vmem [shape: f32[1,32], index: 4, kind: input, shape index: {}]   ;;  %s500_s5 = inlined_call_operand.vmem [shape: f32[32,4], index: 5, kind: input, shape index: {}]   ;;  %s501_s6 = inlined_call_operand.vmem [shape: f32[1,4], index: 6, kind: input, shape index: {}]   ;;  %s502_s7 = inlined_call_operand.vmem [shape: f32[8,4], index: 7, kind: output, shape index: {}]  }
   0x1   :  { %s20_s25 = sshll.u32 %s395_s24, 4  ;;  %s371_s28 = scalar_lea.hbm %s496_s1, 256  ;;  %s21_s25 = int_to_ptr.vmem [resolvable:$true] %s20_s25 }
   0x2   :  { %p372_p0 = scmp.ne.s32.totalorder %s496_s1, %s371_s28  ;;  %p375_p1 = scmp.lt.u32.totalorder %s371_s28, %s496_s1 }
   0x4   :  { %p377_p2 = pnand %p375_p1, %p372_p0 }
   0x6   :  { %380 = shalt.err (!%p377_p2)
}
   0x7   :  { %s381_s10 = scalar_lea.vmem %s21_s25, 256  ;;  %p386_p4 = scmp.lt.s32.totalorder %s21_s25, %s21_s25 }
   0x8   :  { %p382_p3 = scmp.ne.s32.totalorder %s21_s25, %s381_s10  ;;  %p387_p5 = scmp.lt.s32.totalorder %s381_s10, %s381_s10 }
   0xa   :  { %p388_p6 = por %p387_p5, %p386_p4 }
   0xc   :  { %p389_p7 = pnand %p388_p6, %p382_p3 }
   0xe   :  { %392 = shalt.err (!%p389_p7)
}
   0xf   :  { %s396_s11 = smov 128   ;;  %s397_s12 = smov 8  }
  0x10   :  { %26 = dma.hbm_to_vmem [thread:$0]  %s496_s1, 256, %s21_s25, [#allocation3], %s396_s11, %s396_s11, %s397_s12  }
  0x11   :  { %393 = dma.done.wait [#allocation3], 256  }
  0x12   :  { %394 = vsyncadd [#allocation3], 4294967040  ;;  %v398_v0 = vmov 0.0|0.0   ;;  %vm399_vm0 = vmmov 0   ;;  %v400_v1 = vmov 0.0   ;;  %v41_v2 = vld [vmem:[#allocation2] sm:$0xff] }
  0x13   :  { %350 = vmatprep.subr.bf16.mxu0 %v398_v0  ;;  %325 = vmatprep.mubr.msk.f32.mxu0 %vm399_vm0, %v400_v1  ;;  %v42_v3 = vld [vmem:[#allocation2 + $0x8] sm:$0xff]  ;;  %v125_v5 = vld [vmem:[%s498_s3] sm:$0xff]  ;;  %vm50_vm1 = vcmask 130048   ;;  %v127_v9 = vld [vmem:[%s498_s3 + $0x10] sm:$0xff]  ;;  %vm136_vm2 = vcmask 261120   ;;  %vm295_vm3 = vcmask 31744  }
  0x14   :  { %353 = vmatprep.subr.bf16.mxu1 %v398_v0  ;;  %336 = vmatprep.mubr.msk.f32.mxu1 %vm399_vm0, %v400_v1  ;;  %v351_v4 = vpack.c.bf16 %v42_v3, %v41_v2  ;;  %v126_v6 = vld [vmem:[%s498_s3 + $0x8] sm:$0xff]  ;;  %v40_v8 = vld [vmem:[%s495_s0] sm:$0xff]  ;;  %v128_v10 = vld [vmem:[%s498_s3 + $0x18] sm:$0xff] }
  0x15   :  { %v354_v7 = vpack.c.bf16 %v126_v6, %v125_v5  ;;  %v357_v11 = vpack.c.bf16 %v128_v10, %v127_v9  ;;  %v211_v12 = vld [vmem:[%s500_s5] sm:$0xff]  ;;  %v212_v13 = vld [vmem:[%s500_s5 + $0x8] sm:$0xff]  ;;  %v213_v20 = vld [vmem:[%s500_s5 + $0x10] sm:$0xff] }
  0x16   :  { %352 = vmatpush3.bf16.msra.mxu0 %v351_v4  ;;  %v360_v14 = vpack.c.bf16 %v212_v13, %v211_v12  ;;  %v302_v15 = vld [vmem:[%s497_s2] ss:$0 sm:$0xff]  ;;  %v214_v21 = vld [vmem:[%s500_s5 + $0x18] sm:$0xff] }
  0x17   :  { %355 = vmatpush3.bf16.msra.mxu1 %v354_v7  ;;  %359 = vmatprep.subr.bf16.mxu0 %v398_v0  ;;  %v363_v22 = vpack.c.bf16 %v214_v21, %v213_v20  ;;  %v304_v23 = vld [vmem:[%s499_s4] ss:$0 sm:$0xff] }
  0x18   :  { %356 = vmatprep.subr.bf16.mxu1 %v398_v0  ;;  %v306_v28 = vld [vmem:[%s501_s6] ss:$0 sm:$0xff] }
  0x19   :  { %326 = vmatmul.mubr.msk.f32.vlgmr.msra.gmra.mrb[0].mxu0 %vm50_vm1, %v40_v8 }
  0x1a   :  { %347 = vmatprep.mubr.msk.f32.mxu0 %vm399_vm0, %v400_v1  ;;  %361 = vmatpush3.bf16.msra.mxu0 %v360_v14 }
  0x1b   :  { %358 = vmatpush3.bf16.msra.mxu1 %v357_v11  ;;  %362 = vmatprep.subr.bf16.mxu0 %v398_v0 }
  0x1e   :  { %364 = vmatpush3.bf16.msra.mxu0 %v363_v22 }
  0xec   :  { %v120_v16 = vpop.f32.mrb[0].mxu0 }
  0xed   :  { %v121_v17 = vadd.f32 %v302_v15, %v120_v16  ;;  %v327_v18 = vpop.f32.mrb[1].mxu0 }
  0xef   :  { %v124_v19 = vmax.f32 %v121_v17, 0.0 }
  0xf1   :  { %337 = vmatmul.mubr.msk.f32.vlgmr.msra.gmra.mrb[0].mxu1 %vm136_vm2, %v124_v19 }
 0x1c4   :  { %v206_v24 = vpop.f32.mrb[0].mxu1 }
 0x1c5   :  { %v207_v25 = vadd.f32 %v304_v23, %v206_v24  ;;  %v338_v26 = vpop.f32.mrb[1].mxu1 }
 0x1c7   :  { %v210_v27 = vmax.f32 %v207_v25, 0.0 }
 0x1c9   :  { %348 = vmatmul.mubr.msk.f32.vlgmr.msra.gmra.mrb[2].mxu0 %vm136_vm2, %v210_v27 }
 0x29c   :  { %v291_v29 = vpop.f32.mrb[2].mxu0 }
 0x29d   :  { %v292_v30 = vadd.f32 %v306_v28, %v291_v29  ;;  %v349_v31 = vpop.f32.mrb[3].mxu0 }
 0x29f   :  { %296 = vst.msk [vmem:[%s502_s7] sm:$0xff] %vm295_vm3, %v292_v30 }
 0x2a0   :  { %301 = vsyncpa [#allocation3], 1 }

</bundles_post_ra>
